<compile_context>
chip_gen: v5e
topology: v5e:2x2
jax: 0.10.0
libtpu: 0.0.40
codegen_flags: <defaults>
</compile_context>

<pallas_src>
import jax
import jax.numpy as jnp
from jax.experimental import pallas as pl
from jax.experimental.pallas import tpu as pltpu

_LANES = 128
_SINGLE_BLOCK_ROWS = 512       # <= this many rows: one block / one grid step
_ABS_MAX_BLOCK_ROWS = 16384    # 8 MiB per f32 buffer hard cap


# ---------------------------------------------------------------------------
# Hardware-derived sizing
# ---------------------------------------------------------------------------
def _vmem_capacity_bytes():
    try:
        cap = getattr(pltpu.get_tpu_info(), "vmem_capacity_bytes", None)
        if cap:
            return int(cap)
    except Exception:
        pass
    return 64 * 1024 * 1024  # conservative (v7x-sized) fallback


def _vmem_limit_bytes():
    # ~3/4 of physical VMEM as the scoped limit (96 MiB v5e/v6e, 48 MiB v7x).
    return min((_vmem_capacity_bytes() * 3) // 4, 128 * 1024 * 1024)


def _round_up(x, m):
    return ((x + m - 1) // m) * m


def _pick_block_rows(m, num_streams, itemsize):
    """Largest VMEM-friendly row block; >=2 grid steps for big inputs."""
    if m <= _SINGLE_BLOCK_ROWS:
        return m  # full extent: always a legal block shape
    # 2/3 of the scoped limit goes to pipeline buffers (each stream is
    # double-buffered); the rest is headroom for Mosaic-internal scratch.
    budget = (_vmem_limit_bytes() * 2) // 3
    per_buffer = budget // (num_streams * 2)
    rows = per_buffer // (_LANES * itemsize)
    rows = max(_SINGLE_BLOCK_ROWS, (rows // 8) * 8)
    rows = min(rows, _ABS_MAX_BLOCK_ROWS)
    # Guarantee >= 2 grid steps so both v7x TensorCores receive work and the
    # pipeline can overlap DMA with compute.
    half = _round_up(pl.cdiv(m, 2), 8)
    return min(rows, half)


# ---------------------------------------------------------------------------
# Pallas kernels
# ---------------------------------------------------------------------------
def _lower_bound_fwd_kernel(bound_ref, x_ref, o_ref):
    # bound_ref: SMEM (1, 1) scalar; x_ref / o_ref: VMEM (block_rows, 128).
    o_ref[...] = jnp.maximum(x_ref[...], bound_ref[0, 0])


def _lower_bound_bwd_kernel(bound_ref, x_ref, g_ref, dx_ref):
    b = bound_ref[0, 0]
    x = x_ref[...]
    g = g_ref[...]                       # native cotangent dtype
    keep = jnp.logical_or(x >= b, g < 0)
    # Cast to dx dtype only when forming the result (in-kernel cast is free
    # VPU work; a wrapper-side cast would be an extra full HBM pass).
    dx_ref[...] = jnp.where(keep, g, jnp.zeros_like(g)).astype(dx_ref.dtype)


# ---------------------------------------------------------------------------
# Tiled elementwise launcher over a lane-dense (M, 128) slab
# ---------------------------------------------------------------------------
def _launch_rows(kernel, bound2d, *tiles, out_dtype, alias_last=False):
    m = tiles[0].shape[0]
    num_streams = len(tiles) + 1  # inputs + output
    itemsize = max([t.dtype.itemsize for t in tiles]
                   + [jnp.dtype(out_dtype).itemsize])
    block_rows = _pick_block_rows(m, num_streams, itemsize)
    grid = (pl.cdiv(m, block_rows),)
    vspec = pl.BlockSpec((block_rows, _LANES), lambda i: (i, 0))

    extra = {}
    if alias_last:
        # dx reuses g's HBM buffer (g is dead after the backward pass).
        extra["input_output_aliases"] = {len(tiles): 0}

    bytes_accessed = sum(int(t.size) * t.dtype.itemsize for t in tiles)
    bytes_accessed += m * _LANES * jnp.dtype(out_dtype).itemsize

    return pl.pallas_call(
        kernel,
        out_shape=jax.ShapeDtypeStruct((m, _LANES), out_dtype),
        grid=grid,
        in_specs=[pl.BlockSpec(memory_space=pltpu.MemorySpace.SMEM)]
        + [vspec] * len(tiles),
        out_specs=vspec,
        compiler_params=pltpu.CompilerParams(
            dimension_semantics=("parallel",),
            vmem_limit_bytes=_vmem_limit_bytes(),
        ),
        cost_estimate=pl.CostEstimate(
            flops=3 * m * _LANES, transcendentals=0,
            bytes_accessed=bytes_accessed),
        **extra,
    )(bound2d, *tiles)


# ---------------------------------------------------------------------------
# LowerBound op with the module's custom gradient semantics
# ---------------------------------------------------------------------------
@jax.custom_vjp
def lower_bound(x, bound):
    b = jnp.asarray(bound, x.dtype).reshape(())
    bound2d = b.reshape(1, 1)
    flat = x.reshape(-1)
    n = flat.shape[0]
    n_main = (n // _LANES) * _LANES

    if n_main == 0:                      # tiny input: plain jnp
        return jnp.maximum(x, b)
    if n_main == n:                      # 128-aligned: free reshape, no pad
        out = _launch_rows(_lower_bound_fwd_kernel, bound2d,
                           flat.reshape(-1, _LANES), out_dtype=x.dtype)
        return out.reshape(x.shape)
    # Misaligned: kernel on the aligned prefix, tiny jnp op on the tail.
    main = flat[:n_main].reshape(-1, _LANES)
    out_main = _launch_rows(_lower_bound_fwd_kernel, bound2d, main,
                            out_dtype=x.dtype).reshape(-1)
    out_tail = jnp.maximum(flat[n_main:], b)
    return jnp.concatenate([out_main, out_tail]).reshape(x.shape)


def _lb_fwd(x, bound):
    return lower_bound(x, bound), (x, bound)


def _lb_bwd(res, g):
    x, bound = res
    b = jnp.asarray(bound, x.dtype).reshape(())
    bound2d = b.reshape(1, 1)
    flat_x = x.reshape(-1)
    flat_g = g.reshape(-1)
    n = flat_x.shape[0]
    n_main = (n // _LANES) * _LANES
    dbound = jnp.zeros_like(jnp.asarray(bound))  # PyTorch returns None here

    if n_main == 0:
        dx = jnp.where((x >= b) | (g < 0), g.astype(x.dtype),
                       jnp.zeros_like(x))
        return dx, dbound

    x_main = flat_x[:n_main].reshape(-1, _LANES)
    g_main = flat_g[:n_main].reshape(-1, _LANES)
    dx_main = _launch_rows(_lower_bound_bwd_kernel, bound2d, x_main, g_main,
                           out_dtype=x.dtype,
                           alias_last=(g.dtype == x.dtype)).reshape(-1)
    if n_main == n:
        dx = dx_main.reshape(x.shape)
    else:
        x_t = flat_x[n_main:]
        g_t = flat_g[n_main:]
        dx_t = jnp.where((x_t >= b) | (g_t < 0), g_t,
                         jnp.zeros_like(g_t)).astype(x.dtype)
        dx = jnp.concatenate([dx_main, dx_t]).reshape(x.shape)
    return dx, dbound


lower_bound.defvjp(_lb_fwd, _lb_bwd)


class LowerBound:
    """JAX/Pallas equivalent of the detectron2 `LowerBound` module.

    Note: the gradient w.r.t. `bound` is zero (PyTorch returns None), so
    `bound` is effectively non-trainable through this op.
    """

    def __init__(self, bound: float):
        self.bound = jnp.array([float(bound)], dtype=jnp.float32)

    def __call__(self, x):
        return lower_bound(x, self.bound)


# ---------------------------------------------------------------------------
if __name__ == "__main__":
    key = jax.random.PRNGKey(0)
    # NCHW input like the PyTorch module; the op is elementwise so the kernel
    # works on a flattened lane-dense view.
    x = jax.random.normal(key, (2, 4, 16, 16), dtype=jnp.float32)

    module = LowerBound(0.11)

    # Forward.
    y = jax.block_until_ready(module(x))
    y_ref = jnp.maximum(x, module.bound[0])
    assert y.shape == x.shape and y.dtype == x.dtype
    assert jnp.allclose(y, y_ref), "forward mismatch vs reference"

    # Backward (custom gradient).
    dx = jax.block_until_ready(
        jax.grad(lambda a: jnp.sum(lower_bound(a, module.bound)))(x))
    g = jnp.ones_like(x)
    dx_ref = jnp.where((x >= module.bound[0]) | (g < 0), g, 0.0)
    assert jnp.allclose(dx, dx_ref), "backward mismatch vs reference"

    # Misaligned element count exercises the aligned-prefix + jnp-tail path.
    x2 = jax.random.normal(jax.random.PRNGKey(0), (5, 131), dtype=jnp.float32)
    y2 = jax.block_until_ready(module(x2))
    assert jnp.allclose(y2, jnp.maximum(x2, module.bound[0])), "tail path mismatch"

    print("KERNEL_OK")
</pallas_src>

<mosaic_0001>
module attributes {stable_mosaic.version = 11 : i64} {
  func.func @_lower_bound_fwd_kernel(%arg0: i32, %arg1: memref<1x1xf32, #tpu.memory_space<smem>>, %arg2: memref<16x128xf32, #tpu.memory_space<vmem>>, %arg3: memref<16x128xf32, #tpu.memory_space<vmem>>) attributes {dimension_semantics = [#tpu.dimension_semantics<parallel>], iteration_bounds = array<i64: 1>, scalar_prefetch = 0 : i64, scratch_operands = 0 : i64, tpu.core_type = #tpu.core_type<tc>, window_params = [{transform_indices = @transform_0, window_bounds = array<i64: 1, 1>}, {transform_indices = @transform_1, window_bounds = array<i64: 16, 128>}, {transform_indices = @transform_2, window_bounds = array<i64: 16, 128>}]} {
    %c0 = arith.constant 0 : index
    %c0_0 = arith.constant 0 : index
    %0 = vector.load %arg2[%c0, %c0_0] : memref<16x128xf32, #tpu.memory_space<vmem>>, vector<16x128xf32>
    %c0_1 = arith.constant 0 : index
    %c0_2 = arith.constant 0 : index
    %1 = memref.load %arg1[%c0_1, %c0_2] : memref<1x1xf32, #tpu.memory_space<smem>>
    %2 = vector.broadcast %1 : f32 to vector<16x128xf32>
    %3 = arith.maximumf %0, %2 : vector<16x128xf32>
    %c0_3 = arith.constant 0 : index
    %c0_4 = arith.constant 0 : index
    %4 = vector.load %arg3[%c0_3, %c0_4] : memref<16x128xf32, #tpu.memory_space<vmem>>, vector<16x128xf32>
    tpu.vector_store %arg3[%c0_3, %c0_4], %3 {strides = array<i32>} : memref<16x128xf32, #tpu.memory_space<vmem>>, vector<16x128xf32>,
    return
  }
  func.func @transform_0(%arg0: i32) -> (i32, i32) {
    %c0_i32 = arith.constant 0 : i32
    %c0_i32_0 = arith.constant 0 : i32
    %c0_i32_1 = arith.constant 0 : i32
    return %c0_i32, %c0_i32_0 : i32, i32
  }
  func.func @transform_1(%arg0: i32) -> (i32, i32) {
    %c0_i32 = arith.constant 0 : i32
    %c0_i32_0 = arith.constant 0 : i32
    return %arg0, %c0_i32 : i32, i32
  }
  func.func @transform_2(%arg0: i32) -> (i32, i32) {
    %c0_i32 = arith.constant 0 : i32
    %c0_i32_0 = arith.constant 0 : i32
    return %arg0, %c0_i32 : i32, i32
  }
}

</mosaic_0001>

<bundles_post_ra>
// kernel: tpu_custom_call.1
= control target key start
LH: loop header
LB: loop body
LE: loop exit
PB: predicated region body
PF: predicated region fallthrough
CT: control target
= control target key end

     0   :  { %8 = vsyncpa [#allocation4], 0  ;;  %s140_s0 = inlined_call_operand.<no memory space> [shape: f32[1,1], index: 0, kind: input, shape index: {}]   ;;  %s141_s1 = inlined_call_operand.hbm [shape: f32[16,128], index: 1, kind: input, shape index: {}]   ;;  %s142_s2 = inlined_call_operand.hbm [shape: f32[16,128], index: 2, kind: output, shape index: {}]  }
   0x1   :  { %9 = vsyncpa [#allocation5], 0  ;;  %s16_s11 = sshll.u32 %s141_s1, 4  ;;  %s112_s12 = smov [#allocation3]   ;;  %s17_s11 = int_to_ptr.hbm [resolvable:$true] %s16_s11 }
   0x2   :  { %s18_s13 = sshll.u32 %s112_s12, 4  ;;  %s113_s14 = smov 128   ;;  %s19_s13 = int_to_ptr.vmem [resolvable:$true] %s18_s13 }
   0x3   :  { %s114_s15 = smov 8  }
   0x4   :  { %24 = dma.hbm_to_vmem [thread:$0]  %s17_s11, 256, %s19_s13, [#allocation4], %s113_s14, %s113_s14, %s114_s15  }
   0x5   :  { %108 = dma.done.wait [#allocation4], 256  }
   0x6   :  { %109 = vsyncadd [#allocation4], 4294967040  ;;  %v32_v0 = vstv %s140_s0  ;;  %s115_s18 = smov [#allocation6]   ;;  %s43_s22 = sshll.u32 %s142_s2, 4  ;;  %v29_v1 = vld [vmem:[#allocation3] sm:$0xff]  ;;  %v30_v2 = vld [vmem:[#allocation3 + $0x8] sm:$0xff]  ;;  %s44_s22 = int_to_ptr.hbm [resolvable:$true] %s43_s22 }
   0x7   :  { %s41_s19 = sshll.u32 %s115_s18, 4  ;;  %v33_v3 = vmax.f32 %v29_v1, %v32_v0  ;;  %v34_v4 = vmax.f32 %v30_v2, %v32_v0  ;;  %s42_s19 = int_to_ptr.vmem [resolvable:$true] %s41_s19 }
   0x9   :  { %35 = vst [vmem:[#allocation6] sm:$0xff] %v33_v3 }
   0xa   :  { %36 = vst [vmem:[#allocation6 + $0x8] sm:$0xff] %v34_v4 }
   0xb   :  { %49 = dma.vmem_to_hbm [thread:$0]  %s42_s19, 256, %s44_s22, [#allocation5], %s113_s14, %s113_s14, %s114_s15  }
   0xc   :  { %110 = dma.done.wait [#allocation5], 256  }
   0xd   :  { %111 = vsyncadd [#allocation5], 4294967040 }
   0xe   :  { %54 = vsyncpa [#allocation4], 1 }
   0xf   :  { %55 = vsyncpa [#allocation5], 1 }

</bundles_post_ra>
